<compile_context>
chip_gen: v7x
topology: tpu7x:2x2x1
jax: 0.10.0
libtpu: 0.0.40
codegen_flags: <defaults>
</compile_context>

<pallas_src>
import jax
import jax.numpy as jnp
from jax.experimental import pallas as pl
from jax.experimental.pallas import tpu as pltpu


def _square_kernel(p_ref, o_ref):
    # Scalar path: sld -> smul -> sst, all in SMEM.
    v = p_ref[0]
    o_ref[0] = v * v


def square_forward(param_scalar: jax.Array) -> jax.Array:
    """Equivalent of Square.forward(): returns param ** 2 as a 0-d scalar."""
    # Glue: stage the scalar as a tiny (1,) f32 array for the SMEM kernel.
    p1d = jnp.asarray(param_scalar, dtype=jnp.float32).reshape(1)

    out1d = pl.pallas_call(
        _square_kernel,
        out_shape=jax.ShapeDtypeStruct((1,), jnp.float32),
        in_specs=[pl.BlockSpec(memory_space=pltpu.SMEM)],
        out_specs=pl.BlockSpec(memory_space=pltpu.SMEM),
        input_output_aliases={0: 0},
    )(p1d)

    # Glue: back to a 0-d scalar, matching torch's `tensor(start) ** 2` shape.
    return out1d.reshape(())


if __name__ == "__main__":
    # Deterministic parameter init (module __init__ takes `start`; we draw it
    # deterministically instead of loading a checkpoint).
    key = jax.random.PRNGKey(0)
    start = jax.random.normal(key, (), dtype=jnp.float32)

    out = square_forward(start)
    out = jax.block_until_ready(out)

    expected = start * start
    assert out.shape == ()
    assert jnp.allclose(out, expected, rtol=1e-6, atol=1e-6)
    print("KERNEL_OK")
</pallas_src>

<mosaic_0001>
module attributes {stable_mosaic.version = 11 : i64} {
  func.func @_square_kernel(%arg0: memref<1xf32, #tpu.memory_space<smem>>, %arg1: memref<1xf32, #tpu.memory_space<smem>>) attributes {dimension_semantics = [], scalar_prefetch = 0 : i64, scratch_operands = 0 : i64, tpu.core_type = #tpu.core_type<tc>} {
    %c0 = arith.constant 0 : index
    %0 = memref.load %arg0[%c0] : memref<1xf32, #tpu.memory_space<smem>>
    %1 = arith.mulf %0, %0 : f32
    %c0_0 = arith.constant 0 : index
    %2 = memref.load %arg1[%c0_0] : memref<1xf32, #tpu.memory_space<smem>>
    memref.store %1, %arg1[%c0_0] : memref<1xf32, #tpu.memory_space<smem>>
    return
  }
}

</mosaic_0001>

<bundles_post_ra>
// kernel: tpu_custom_call.1
= control target key start
LH: loop header
LB: loop body
LE: loop exit
PB: predicated region body
PF: predicated region fallthrough
CT: control target
= control target key end

     0   :  { %7 = vsyncpa [#allocation4], 0  ;;  %s67_s0 = inlined_call_operand.<no memory space> [shape: f32[1], index: 0, kind: input, shape index: {}, may-alias: {0,1}]   ;;  %s68_s1 = inlined_call_operand.hbm [shape: f32[1], index: 1, kind: output, shape index: {}, may-alias: {0,1}]  }
   0x1   :  { %s11_s8 = smul.f32 %s67_s0, %s67_s0  ;;  %s28_s11 = scalar_lea.hbm %s68_s1, 16 }
   0x2   :  { %p29_p0 = scmp.ne.s32.totalorder %s68_s1, %s28_s11  ;;  %p32_p1 = scmp.lt.u32.totalorder %s28_s11, %s68_s1 }
   0x3   :  { %13 = sst [smem:[#allocation3]] %s11_s8 }
   0x4   :  { %p34_p2 = pnand %p32_p1, %p29_p0 }
   0x6   :  { %37 = shalt.err (!%p34_p2)
}
   0x7   :  { %s40_s16 = smov [#allocation3]  }
   0x8   :  { %21 = dma.smem_to_hbm %s40_s16, 16, %s68_s1, [#allocation4]  }
   0x9   :  { %38 = dma.done.wait [#allocation4], 16  }
   0xa   :  { %39 = vsyncadd [#allocation4], 4294967280 }
   0xb   :  { %25 = sfence }
   0xc   :  { %26 = vsyncpa [#allocation4], 1 }

</bundles_post_ra>
